<compile_context>
chip_gen: v6e
topology: v6e:2x2x1
jax: 0.10.0
libtpu: 0.0.40
codegen_flags: <defaults>
</compile_context>

<pallas_src>
import jax
import jax.numpy as jnp
from jax.experimental import pallas as pl
from jax.experimental.pallas import tpu as pltpu


def _linear_kernel(x_ref, w_ref, b_ref, o_ref):
    # x_ref : VMEM (tr, F*g) f32   -- lane-dense tile of the grouped view of x
    # w_ref : VMEM (F*g, g) f32    -- block-diagonal weights (resident)
    # b_ref : SMEM (1,)     f32    -- bias scalar
    # o_ref : VMEM (tr, g)  f32    -- g outputs per grouped row
    o_ref[...] = (
        jnp.dot(x_ref[...], w_ref[...], preferred_element_type=jnp.float32)
        + b_ref[0]
    ).astype(o_ref.dtype)


def linear_regression_ols(x, weight, bias, *, vmem_budget_bytes=12 * 1024 * 1024):
    """Forward pass of linearRegressionOLS: x @ W^T + b.

    x: (B, F) f32, weight: (O, F) f32 with O == 1, bias: (O,) f32 -> (B, O) f32
    """
    B, F = x.shape
    O, Fw = weight.shape
    assert Fw == F and O == 1

    # Pack g batch rows per lane-dense row: (B, F) -> (R, F*g).  Pure reshape of
    # contiguous row-major data => no HBM data movement, no padding pass.
    for g in (64, 32, 16, 8, 4, 2, 1):  # g=64 gives 10*64=640 lanes (100% dense)
        if B % g == 0:
            break
    R, C = B // g, F * g
    xg = x.reshape(R, C)

    # Block-diagonal weight (C, g): wmat[i*F + f, j] = w[f] * (i == j), so
    # (xg @ wmat)[r, j] = sum_f x[r*g + j, f] * w[f].
    wmat = jnp.kron(jnp.eye(g, dtype=x.dtype), weight.reshape(F, 1))

    # Rows of the grouped view per grid step: as large as a ~12 MiB
    # double-buffered VMEM budget allows (amortizes per-step pipeline overhead),
    # split into >= 2 steps when possible (v7x megacore), multiple of 8 sublanes
    # unless it covers the full array.
    lane = 128
    c_pad = -(-C // lane) * lane            # input lanes after VMEM padding
    g_pad = -(-g // lane) * lane            # output lanes after VMEM padding
    bytes_per_row = 2 * 4 * (c_pad + g_pad)  # double-buffered in + out, f32
    tr_budget = max(8, vmem_budget_bytes // bytes_per_row)
    if R <= 8:
        tr = R
    else:
        tr = min(tr_budget, (R + 1) // 2)
        tr = max(8, (tr // 8) * 8)
    grid = (pl.cdiv(R, tr),)

    yg = pl.pallas_call(
        _linear_kernel,
        out_shape=jax.ShapeDtypeStruct((R, g), x.dtype),
        grid=grid,
        in_specs=[
            pl.BlockSpec((tr, C), lambda i: (i, 0)),              # x tile
            pl.BlockSpec((C, g), lambda i: (0, 0)),               # weights, resident
            pl.BlockSpec(memory_space=pltpu.MemorySpace.SMEM),    # bias scalar
        ],
        out_specs=pl.BlockSpec((tr, g), lambda i: (i, 0)),
        compiler_params=pltpu.CompilerParams(
            dimension_semantics=("parallel",),
            vmem_limit_bytes=32 * 1024 * 1024,
        ),
    )(xg, wmat, bias)

    # (R, g) row-major == batch order; free reshape back to (B, 1).
    return yg.reshape(B, O)


if __name__ == "__main__":
    key = jax.random.PRNGKey(0)
    kx, kw, kb = jax.random.split(key, 3)

    batch = 8
    in_features = 10
    out_features = 1

    # Deterministic parameter init (mimics nn.Linear's uniform(-1/sqrt(in), 1/sqrt(in)))
    bound = 1.0 / jnp.sqrt(jnp.float32(in_features))
    weight = jax.random.uniform(
        kw, (out_features, in_features), jnp.float32, -bound, bound
    )
    bias = jax.random.uniform(kb, (out_features,), jnp.float32, -bound, bound)

    x = jax.random.normal(kx, (batch, in_features), jnp.float32)

    y = linear_regression_ols(x, weight, bias)
    jax.block_until_ready(y)

    # Reference check against plain JAX
    y_ref = x @ weight.T + bias
    assert y.shape == (batch, out_features)
    assert jnp.allclose(y, y_ref, atol=1e-5, rtol=1e-5)

    print("KERNEL_OK")
</pallas_src>

<mosaic_0001>
module attributes {stable_mosaic.version = 11 : i64} {
  func.func @_linear_kernel(%arg0: i32, %arg1: memref<1x80xf32, #tpu.memory_space<vmem>>, %arg2: memref<80x8xf32, #tpu.memory_space<vmem>>, %arg3: memref<1xf32, #tpu.memory_space<smem>>, %arg4: memref<1x8xf32, #tpu.memory_space<vmem>>) attributes {dimension_semantics = [#tpu.dimension_semantics<parallel>], iteration_bounds = array<i64: 1>, scalar_prefetch = 0 : i64, scratch_operands = 0 : i64, tpu.core_type = #tpu.core_type<tc>, window_params = [{transform_indices = @transform_0, window_bounds = array<i64: 1, 80>}, {pipeline_mode = #tpu.pipeline_mode<synchronous>, transform_indices = @transform_1, window_bounds = array<i64: 80, 8>}, {transform_indices = @transform_2, window_bounds = array<i64: 1>}, {transform_indices = @transform_3, window_bounds = array<i64: 1, 8>}]} {
    %c0 = arith.constant 0 : index
    %c0_0 = arith.constant 0 : index
    %0 = vector.load %arg1[%c0, %c0_0] : memref<1x80xf32, #tpu.memory_space<vmem>>, vector<1x80xf32>
    %c0_1 = arith.constant 0 : index
    %c0_2 = arith.constant 0 : index
    %1 = vector.load %arg2[%c0_1, %c0_2] : memref<80x8xf32, #tpu.memory_space<vmem>>, vector<80x8xf32>
    %cst = arith.constant dense<0.000000e+00> : vector<1x8xf32>
    %2 = tpu.matmul %0, %1, %cst {dimension_numbers = #tpu.dot_dimension_numbers<[1], [0], [0], [1], [0, 0, 1, 1], [], []>} : vector<1x80xf32>, vector<80x8xf32>, vector<1x8xf32> -> vector<1x8xf32>
    %c0_3 = arith.constant 0 : index
    %3 = memref.load %arg3[%c0_3] : memref<1xf32, #tpu.memory_space<smem>>
    %4 = vector.broadcast %3 : f32 to vector<1x8xf32>
    %5 = arith.addf %2, %4 : vector<1x8xf32>
    %c0_4 = arith.constant 0 : index
    %c0_5 = arith.constant 0 : index
    %6 = vector.load %arg4[%c0_4, %c0_5] : memref<1x8xf32, #tpu.memory_space<vmem>>, vector<1x8xf32>
    tpu.vector_store %arg4[%c0_4, %c0_5], %5 {strides = array<i32>} : memref<1x8xf32, #tpu.memory_space<vmem>>, vector<1x8xf32>,
    return
  }
  func.func @transform_0(%arg0: i32) -> (i32, i32) {
    %c0_i32 = arith.constant 0 : i32
    %c0_i32_0 = arith.constant 0 : i32
    return %arg0, %c0_i32 : i32, i32
  }
  func.func @transform_1(%arg0: i32) -> (i32, i32) {
    %c0_i32 = arith.constant 0 : i32
    %c0_i32_0 = arith.constant 0 : i32
    %c0_i32_1 = arith.constant 0 : i32
    return %c0_i32, %c0_i32_0 : i32, i32
  }
  func.func @transform_2(%arg0: i32) -> i32 {
    %c0_i32 = arith.constant 0 : i32
    %c0_i32_0 = arith.constant 0 : i32
    return %c0_i32 : i32
  }
  func.func @transform_3(%arg0: i32) -> (i32, i32) {
    %c0_i32 = arith.constant 0 : i32
    %c0_i32_0 = arith.constant 0 : i32
    return %arg0, %c0_i32 : i32, i32
  }
}

</mosaic_0001>

<bundles_post_ra>
// kernel: tpu_custom_call.1
= control target key start
LH: loop header
LB: loop body
LE: loop exit
PB: predicated region body
PF: predicated region fallthrough
CT: control target
= control target key end

     0   :  { %v179_v1 = vmov 0.0   ;;  %vm180_vm0 = vmmov 0   ;;  %s241_s0 = inlined_call_operand.vmem [shape: f32[1,80], index: 0, kind: input, shape index: {}]   ;;  %s242_s1 = inlined_call_operand.vmem [shape: f32[80,8], index: 1, kind: input, shape index: {}]   ;;  %s243_s2 = inlined_call_operand.<no memory space> [shape: f32[1], index: 2, kind: input, shape index: {}]   ;;  %s244_s3 = inlined_call_operand.hbm [shape: f32[1,8], index: 3, kind: output, shape index: {}]  }
   0x1   :  { %v26_v0 = vld [vmem:[%s242_s1 + $0x48] sm:$0xff]  ;;  %131 = vmatprep.subr.mxu0 %v179_v1  ;;  %v25_v2 = vld [vmem:[%s242_s1 + $0x40] sm:$0xff]  ;;  %151 = vmatprep.mubr.msk.f32.mxu0 %vm180_vm0, %v179_v1  ;;  %v24_v3 = vld [vmem:[%s242_s1 + $0x38] sm:$0xff] }
   0x2   :  { %132 = vmatpush3.msra.mxu0 %v26_v0 }
   0x3   :  { %133 = vmatprep.subr.mxu0 %v179_v1 }
   0x4   :  { %9 = vsyncpa [#allocation4], 0  ;;  %134 = vmatpush3.msra.mxu0 %v25_v2  ;;  %v23_v4 = vld [vmem:[%s242_s1 + $0x30] sm:$0xff]  ;;  %v22_v5 = vld [vmem:[%s242_s1 + $0x28] sm:$0xff]  ;;  %vm29_vm1 = vcmask 654336   ;;  %v28_v12 = vstv %s243_s2  ;;  %s181_s9 = smov [#allocation3]  }
   0x5   :  { %135 = vmatprep.subr.mxu0 %v179_v1  ;;  %v21_v6 = vld [vmem:[%s242_s1 + $0x20] sm:$0xff]  ;;  %v20_v7 = vld [vmem:[%s242_s1 + $0x18] sm:$0xff]  ;;  %v19_v8 = vld [vmem:[%s242_s1 + $0x10] sm:$0xff]  ;;  %s111_s10 = sshll.u32 %s181_s9, 4  ;;  %vm103_vm2 = vcmask 57344   ;;  %s112_s10 = int_to_ptr.vmem [resolvable:$true] %s111_s10 }
   0x6   :  { %136 = vmatpush3.msra.mxu0 %v24_v3  ;;  %v18_v9 = vld [vmem:[%s242_s1 + $0x8] sm:$0xff]  ;;  %v17_v10 = vld [vmem:[%s242_s1] sm:$0xff]  ;;  %s157_s1 = scalar_lea.vmem %s112_s10, 16  ;;  %s161_s11 = scalar_lea.vmem %s112_s10, 32 }
   0x7   :  { %137 = vmatprep.subr.mxu0 %v179_v1  ;;  %v16_v11 = vld [vmem:[%s241_s0] sm:$0x1]  ;;  %p158_p0 = scmp.ne.s32.totalorder %s112_s10, %s157_s1  ;;  %p162_p1 = scmp.lt.s32.totalorder %s112_s10, %s112_s10 }
   0x8   :  { %138 = vmatpush3.msra.mxu0 %v23_v4  ;;  %p163_p2 = scmp.lt.s32.totalorder %s161_s11, %s157_s1 }
   0x9   :  { %139 = vmatprep.subr.mxu0 %v179_v1 }
   0xa   :  { %140 = vmatpush3.msra.mxu0 %v22_v5  ;;  %p164_p3 = por %p163_p2, %p162_p1 }
   0xb   :  { %141 = vmatprep.subr.mxu0 %v179_v1 }
   0xc   :  { %142 = vmatpush3.msra.mxu0 %v21_v6  ;;  %p165_p4 = pnand %p164_p3, %p158_p0 }
   0xd   :  { %143 = vmatprep.subr.mxu0 %v179_v1 }
   0xe   :  { %144 = vmatpush3.msra.mxu0 %v20_v7 }
   0xf   :  { %145 = vmatprep.subr.mxu0 %v179_v1 }
  0x10   :  { %146 = vmatpush3.msra.mxu0 %v19_v8 }
  0x11   :  { %147 = vmatprep.subr.mxu0 %v179_v1 }
  0x12   :  { %148 = vmatpush3.msra.mxu0 %v18_v9 }
  0x13   :  { %149 = vmatprep.subr.mxu0 %v179_v1 }
  0x14   :  { %150 = vmatpush3.msra.mxu0 %v17_v10 }
  0x15   :  { %152 = vmatmul.mubr.msk.f32.vlgmr.msra.gmra.mxu0 %vm29_vm1, %v16_v11 }
  0xd5   :  { %v99_v13 = vpop.f32.mrf.mxu0 }
  0xd6   :  { %v100_v14 = vadd.f32 %v99_v13, %v28_v12 }
  0xd7   :  { %v153_v15 = vpop.f32.mrf.mxu0 }
  0xd8   :  { %104 = vst.msk [vmem:[#allocation3] sm:$0x1] %vm103_vm2, %v100_v14 }
  0xd9   :  { %168 = shalt.err (!%p165_p4)
}
  0xda   :  { %114 = dma.vmem_to_hbm [thread:$0]  %s112_s10, 16, %s244_s3, [#allocation4]  }
  0xdb   :  { %177 = dma.done.wait [#allocation4], 16  }
  0xdc   :  { %178 = vsyncadd [#allocation4], 4294967280 }
  0xdd   :  { %118 = vsyncpa [#allocation4], 1 }

</bundles_post_ra>
